<compile_context>
chip_gen: v7x
topology: tpu7x:2x2x1
jax: 0.10.0
libtpu: 0.0.40
codegen_flags: <defaults>
</compile_context>

<pallas_src>
import functools

import numpy as np
import jax
import jax.numpy as jnp
from jax.experimental import pallas as pl
from jax.experimental.pallas import tpu as pltpu


def _meta_loss_kernel(coeffs_ref, logits_ref, refs_ref, out_ref, *,
                      inv_n0, inv_n1, num_events):
    # logits_ref: [D, TB]   duration bins on sublanes, batch on lanes (lane-dense)
    # refs_ref:   [4*num_events, TB]  rows = [dur_percentile, event, fraction, duration]
    # out_ref:    [8, 128]  this core's accumulator tile (one vreg, every element = partial)
    step = pl.program_id(1)

    @pl.when(step == 0)
    def _init():
        out_ref[...] = jnp.zeros_like(out_ref)

    x = logits_ref[...]                                   # [D, TB] f32
    D = x.shape[0]

    # Numerically stable softplus (log1p, matches jax.nn.softplus exactly).
    hazard = jnp.maximum(x, 0.0) + jnp.log1p(jnp.exp(-jnp.abs(x)))

    # Cumulative hazard along the duration-bin (sublane) axis via an in-kernel
    # lower-triangular ones matmul on the otherwise-idle MXU: cum[i] = sum_{k<=i} hazard[k].
    row = jax.lax.broadcasted_iota(jnp.int32, (D, D), 0)
    col = jax.lax.broadcasted_iota(jnp.int32, (D, D), 1)
    tri = (col <= row).astype(jnp.float32)                # [D, D], tri[i,k]=1 iff k<=i
    cum = jnp.dot(tri, hazard, preferred_element_type=jnp.float32)   # [D, TB]
    surv = jnp.exp(-cum)                                  # [D, TB]

    ev = refs_ref[num_events:2 * num_events, :]           # [1, TB] event indicator
    frac = refs_ref[2 * num_events:3 * num_events, :]     # [1, TB] fraction_with_quantile

    # Drop the last duration bin ([:, :-1] in the original layout == last sublane row here).
    keep = jax.lax.broadcasted_iota(jnp.int32, surv.shape, 0) < (D - 1)
    diff = jnp.where(keep, surv - frac, 0.0)

    sum0 = jnp.sum(ev * diff * diff, axis=(0, 1), keepdims=True)     # (1,1)
    sum1 = jnp.sum(x * x, axis=(0, 1), keepdims=True)                # (1,1)

    partial = coeffs_ref[0] * (sum0 * inv_n0) + coeffs_ref[1] * (sum1 * inv_n1)
    out_ref[...] += partial                                # broadcast over the (8,128) tile


def meta_loss(predictions, references, coeffs, num_events: int = 1,
              block_b: int = 128, num_cores: int = 2):
    """predictions: list of [B, D] logits (one per event head); references: [B, 4*num_events]."""
    assert num_events == 1 and len(predictions) == 1
    assert block_b % 128 == 0
    logits = predictions[0].astype(jnp.float32)            # [B, D]
    B, D = logits.shape
    assert references.shape == (B, 4 * num_events)

    # Lane-dense layout: batch on lanes, duration bins on sublanes.
    # TODO(synk): in production, fuse this transpose into the producer of the logits.
    logits_t = logits.T                                    # [D, B]
    refs_t = references.astype(jnp.float32).T              # [4, B]

    if B > block_b:
        tb, nc = block_b, num_cores
    else:
        tb, nc = B, 1
    bp = tb * nc * pl.cdiv(B, tb * nc)                     # pad batch to a tile multiple
    if bp != B:
        # Zero padding contributes exactly 0 to both components (event=0, logit=0);
        # denominators below use the true B.
        logits_t = jnp.pad(logits_t, ((0, 0), (0, bp - B)))
        refs_t = jnp.pad(refs_t, ((0, 0), (0, bp - B)))
    tiles_per_core = bp // (nc * tb)

    kernel = functools.partial(
        _meta_loss_kernel,
        inv_n0=1.0 / (B * (D - 1)),
        inv_n1=1.0 / (B * D),
        num_events=num_events,
    )

    out = pl.pallas_call(
        kernel,
        out_shape=jax.ShapeDtypeStruct((8, nc * 128), jnp.float32),
        grid=(nc, tiles_per_core),
        in_specs=[
            pl.BlockSpec(memory_space=pltpu.MemorySpace.SMEM),           # coeffs (2,)
            pl.BlockSpec((D, tb),
                         lambda c, i: (0, c * tiles_per_core + i)),      # logits^T
            pl.BlockSpec((4 * num_events, tb),
                         lambda c, i: (0, c * tiles_per_core + i)),      # references^T
        ],
        out_specs=pl.BlockSpec((8, 128), lambda c, i: (0, c)),           # per-core partial
        compiler_params=pltpu.CompilerParams(
            dimension_semantics=("parallel", "arbitrary"),
            vmem_limit_bytes=32 * 1024 * 1024,
        ),
        cost_estimate=pl.CostEstimate(
            flops=int(bp * D * (2 * D + 8)),
            transcendentals=int(3 * bp * D),
            bytes_accessed=int(4 * (bp * D + 4 * num_events * bp + nc * 8 * 128 + 2)),
        ),
    )(jnp.asarray(coeffs, jnp.float32), logits_t, refs_t)

    return jnp.sum(out[0, ::128])                          # sum the per-core partials


def _reference(predictions, references, coeffs, num_events: int = 1):
    logits = predictions[0].astype(jnp.float32)
    B, D = logits.shape
    events = references[:, num_events:2 * num_events].astype(jnp.float32)
    fraction = references[:, 2 * num_events:3 * num_events].astype(jnp.float32)
    hazard = jax.nn.softplus(logits)
    surv = jnp.exp(-jnp.cumsum(hazard, axis=1))[:, :-1]
    loss0 = jnp.sum(events * (surv - fraction) ** 2) / (B * (D - 1))
    loss1 = jnp.mean(logits ** 2)
    return coeffs[0] * loss0 + coeffs[1] * loss1


if __name__ == "__main__":
    key = jax.random.PRNGKey(0)
    k1, k2, k3, k4, k5 = jax.random.split(key, 5)

    # batch=200, duration bins=16 (exercises multi-tile accumulation + lane padding)
    B, D = 200, 16
    logits = jax.random.normal(k1, (B, D), jnp.float32)

    # references columns: [duration_percentile, event, fraction_with_quantile, duration]
    dur_pct = jax.random.randint(k2, (B, 1), 0, D).astype(jnp.float32)
    events = (jax.random.uniform(k3, (B, 1)) > 0.5).astype(jnp.float32)
    fraction = jax.random.uniform(k4, (B, 1), jnp.float32)
    duration = jax.random.uniform(k5, (B, 1), jnp.float32) * 10.0
    references = jnp.concatenate([dur_pct, events, fraction, duration], axis=1)

    coeffs = jnp.array([0.7, 0.3], jnp.float32)  # MetaLoss buffer: one coeff per sub-loss

    out = meta_loss([logits], references, coeffs)
    jax.block_until_ready(out)
    ref = _reference([logits], references, coeffs)
    np.testing.assert_allclose(np.asarray(out), np.asarray(ref), rtol=1e-4, atol=1e-5)

    # also exercise the small single-tile (B < 128) path
    out2 = meta_loss([logits[:8]], references[:8], coeffs)
    jax.block_until_ready(out2)
    ref2 = _reference([logits[:8]], references[:8], coeffs)
    np.testing.assert_allclose(np.asarray(out2), np.asarray(ref2), rtol=1e-4, atol=1e-5)

    print("KERNEL_OK")
</pallas_src>

<mosaic_0001>
module attributes {stable_mosaic.version = 11 : i64} {
  func.func @_meta_loss_kernel(%arg0: i32, %arg1: i32, %arg2: memref<2xf32, #tpu.memory_space<smem>>, %arg3: memref<16x128xf32, #tpu.memory_space<vmem>>, %arg4: memref<4x128xf32, #tpu.memory_space<vmem>>, %arg5: memref<8x128xf32, #tpu.memory_space<vmem>>) attributes {dimension_semantics = [#tpu.dimension_semantics<parallel>, #tpu.dimension_semantics<arbitrary>], iteration_bounds = array<i64: 2, 1>, scalar_prefetch = 0 : i64, scratch_operands = 0 : i64, tpu.core_type = #tpu.core_type<tc>, window_params = [{transform_indices = @transform_0, window_bounds = array<i64: 2>}, {transform_indices = @transform_1, window_bounds = array<i64: 16, 128>}, {transform_indices = @transform_2, window_bounds = array<i64: 4, 128>}, {transform_indices = @transform_3, window_bounds = array<i64: 8, 128>}]} {
    %c0_i32 = arith.constant 0 : i32
    %0 = arith.cmpi eq, %arg1, %c0_i32 : i32
    %1 = arith.extui %0 : i1 to i32
    %c0_i32_0 = arith.constant 0 : i32
    %2 = arith.cmpi ne, %1, %c0_i32_0 : i32
    scf.if %2 {
      %cst_18 = arith.constant 0.000000e+00 : f32
      %59 = vector.broadcast %cst_18 : f32 to vector<8x128xf32>
      %c0_19 = arith.constant 0 : index
      %c0_20 = arith.constant 0 : index
      %60 = vector.load %arg5[%c0_19, %c0_20] : memref<8x128xf32, #tpu.memory_space<vmem>>, vector<8x128xf32>
      tpu.vector_store %arg5[%c0_19, %c0_20], %59 {strides = array<i32>} : memref<8x128xf32, #tpu.memory_space<vmem>>, vector<8x128xf32>,
    } else {
    }
    %c0 = arith.constant 0 : index
    %c0_1 = arith.constant 0 : index
    %3 = vector.load %arg3[%c0, %c0_1] : memref<16x128xf32, #tpu.memory_space<vmem>>, vector<16x128xf32>
    %cst = arith.constant 0.000000e+00 : f32
    %4 = vector.broadcast %cst : f32 to vector<16x128xf32>
    %5 = arith.maximumf %3, %4 : vector<16x128xf32>
    %6 = math.absf %3 : vector<16x128xf32>
    %cst_2 = arith.constant 0.000000e+00 : f32
    %7 = vector.broadcast %cst_2 : f32 to vector<16x128xf32>
    %8 = arith.subf %7, %6 : vector<16x128xf32>
    %9 = math.exp %8 : vector<16x128xf32>
    %10 = math.log1p %9 : vector<16x128xf32>
    %11 = arith.addf %5, %10 : vector<16x128xf32>
    %12 = tpu.iota {dimensions = array<i32: 0>} : vector<16x16xi32>
    %13 = tpu.iota {dimensions = array<i32: 1>} : vector<16x16xi32>
    %14 = arith.cmpi sle, %13, %12 : vector<16x16xi32>
    %15 = arith.extui %14 : vector<16x16xi1> to vector<16x16xi32>
    %16 = arith.sitofp %15 : vector<16x16xi32> to vector<16x16xf32>
    %cst_3 = arith.constant dense<0.000000e+00> : vector<16x128xf32>
    %17 = tpu.matmul %16, %11, %cst_3 {dimension_numbers = #tpu.dot_dimension_numbers<[1], [0], [0], [1], [0, 0, 1, 1], [], []>} : vector<16x16xf32>, vector<16x128xf32>, vector<16x128xf32> -> vector<16x128xf32>
    %cst_4 = arith.constant 0.000000e+00 : f32
    %18 = vector.broadcast %cst_4 : f32 to vector<16x128xf32>
    %19 = arith.subf %18, %17 : vector<16x128xf32>
    %20 = math.exp %19 : vector<16x128xf32>
    %c1 = arith.constant 1 : index
    %c0_5 = arith.constant 0 : index
    %21 = vector.load %arg4[%c1, %c0_5] : memref<4x128xf32, #tpu.memory_space<vmem>>, vector<1x128xf32>
    %c2 = arith.constant 2 : index
    %c0_6 = arith.constant 0 : index
    %22 = vector.load %arg4[%c2, %c0_6] : memref<4x128xf32, #tpu.memory_space<vmem>>, vector<1x128xf32>
    %23 = tpu.iota {dimensions = array<i32: 0>} : vector<16x128xi32>
    %c15_i32 = arith.constant 15 : i32
    %24 = vector.broadcast %c15_i32 : i32 to vector<16x128xi32>
    %25 = arith.cmpi slt, %23, %24 : vector<16x128xi32>
    %26 = vector.broadcast %22 : vector<1x128xf32> to vector<16x128xf32>
    %27 = arith.subf %20, %26 : vector<16x128xf32>
    %cst_7 = arith.constant 0.000000e+00 : f32
    %28 = vector.broadcast %cst_7 : f32 to vector<16x128xf32>
    %29 = arith.select %25, %27, %28 : vector<16x128xi1>, vector<16x128xf32>
    %30 = vector.broadcast %21 : vector<1x128xf32> to vector<16x128xf32>
    %31 = arith.mulf %30, %29 : vector<16x128xf32>
    %32 = arith.mulf %31, %29 : vector<16x128xf32>
    %33 = vector.shape_cast %32 : vector<16x128xf32> to vector<1x16x128xf32>
    %cst_8 = arith.constant dense<0.000000e+00> : vector<1xf32>
    %34 = vector.multi_reduction <add>, %33, %cst_8 [1, 2] : vector<1x16x128xf32> to vector<1xf32>
    %35 = vector.shape_cast %34 : vector<1xf32> to vector<1x1x1xf32>
    %36 = vector.extract %35[0, 0, 0] : f32 from vector<1x1x1xf32>
    %37 = vector.broadcast %36 : f32 to vector<1x1xf32>
    %38 = arith.mulf %3, %3 : vector<16x128xf32>
    %39 = vector.shape_cast %38 : vector<16x128xf32> to vector<1x16x128xf32>
    %cst_9 = arith.constant dense<0.000000e+00> : vector<1xf32>
    %40 = vector.multi_reduction <add>, %39, %cst_9 [1, 2] : vector<1x16x128xf32> to vector<1xf32>
    %41 = vector.shape_cast %40 : vector<1xf32> to vector<1x1x1xf32>
    %42 = vector.extract %41[0, 0, 0] : f32 from vector<1x1x1xf32>
    %43 = vector.broadcast %42 : f32 to vector<1x1xf32>
    %c0_10 = arith.constant 0 : index
    %44 = memref.load %arg2[%c0_10] : memref<2xf32, #tpu.memory_space<smem>>
    %cst_11 = arith.constant 3.3333333E-4 : f32
    %45 = vector.broadcast %cst_11 : f32 to vector<1x1xf32>
    %46 = arith.mulf %37, %45 : vector<1x1xf32>
    %47 = vector.broadcast %44 : f32 to vector<1x1xf32>
    %48 = arith.mulf %47, %46 : vector<1x1xf32>
    %c1_12 = arith.constant 1 : index
    %49 = memref.load %arg2[%c1_12] : memref<2xf32, #tpu.memory_space<smem>>
    %cst_13 = arith.constant 3.125000e-04 : f32
    %50 = vector.broadcast %cst_13 : f32 to vector<1x1xf32>
    %51 = arith.mulf %43, %50 : vector<1x1xf32>
    %52 = vector.broadcast %49 : f32 to vector<1x1xf32>
    %53 = arith.mulf %52, %51 : vector<1x1xf32>
    %54 = arith.addf %48, %53 : vector<1x1xf32>
    %c0_14 = arith.constant 0 : index
    %c0_15 = arith.constant 0 : index
    %55 = vector.load %arg5[%c0_14, %c0_15] : memref<8x128xf32, #tpu.memory_space<vmem>>, vector<8x128xf32>
    %56 = vector.broadcast %54 : vector<1x1xf32> to vector<8x128xf32>
    %57 = arith.addf %55, %56 : vector<8x128xf32>
    %c0_16 = arith.constant 0 : index
    %c0_17 = arith.constant 0 : index
    %58 = vector.load %arg5[%c0_16, %c0_17] : memref<8x128xf32, #tpu.memory_space<vmem>>, vector<8x128xf32>
    tpu.vector_store %arg5[%c0_16, %c0_17], %57 {strides = array<i32>} : memref<8x128xf32, #tpu.memory_space<vmem>>, vector<8x128xf32>,
    return
  }
  func.func @transform_0(%arg0: i32, %arg1: i32) -> i32 {
    %c0_i32 = arith.constant 0 : i32
    %c0_i32_0 = arith.constant 0 : i32
    return %c0_i32 : i32
  }
  func.func @transform_1(%arg0: i32, %arg1: i32) -> (i32, i32) {
    %c1_i32 = arith.constant 1 : i32
    %0 = arith.muli %arg0, %c1_i32 : i32
    %1 = arith.addi %0, %arg1 : i32
    %c0_i32 = arith.constant 0 : i32
    %c0_i32_0 = arith.constant 0 : i32
    return %c0_i32, %1 : i32, i32
  }
  func.func @transform_2(%arg0: i32, %arg1: i32) -> (i32, i32) {
    %c1_i32 = arith.constant 1 : i32
    %0 = arith.muli %arg0, %c1_i32 : i32
    %1 = arith.addi %0, %arg1 : i32
    %c0_i32 = arith.constant 0 : i32
    %c0_i32_0 = arith.constant 0 : i32
    return %c0_i32, %1 : i32, i32
  }
  func.func @transform_3(%arg0: i32, %arg1: i32) -> (i32, i32) {
    %c0_i32 = arith.constant 0 : i32
    %c0_i32_0 = arith.constant 0 : i32
    return %c0_i32, %arg0 : i32, i32
  }
}

</mosaic_0001>

<bundles_post_ra>
// kernel: tpu_custom_call.1
= control target key start
LH: loop header
LB: loop body
LE: loop exit
PB: predicated region body
PF: predicated region fallthrough
CT: control target
= control target key end

     0   :  { %s1163_s0 = inlined_call_operand.hbm [shape: f32[2], index: 0, kind: input, shape index: {}]   ;;  %s1164_s1 = inlined_call_operand.hbm [shape: f32[16,256], index: 1, kind: input, shape index: {}]   ;;  %s1165_s2 = inlined_call_operand.hbm [shape: f32[4,256], index: 2, kind: input, shape index: {}]   ;;  %s1166_s3 = inlined_call_operand.hbm [shape: f32[8,256], index: 3, kind: output, shape index: {}]  }
   0x1   :  { %1173 = sst [smem:[#allocation15_spill]] %s1163_s0 }
   0x2   :  { %1174 = sst [smem:[#allocation16_spill]] %s1164_s1 }
   0x3   :  { %8 = vsyncpa [#allocation5], 0 }
   0x4   :  { %9 = vsyncpa [#allocation3], 0 }
   0x5   :  { %11 = vsyncpa [#allocation3 + $0x1], 0 }
   0x6   :  { %12 = vsyncpa [#allocation8], 0 }
   0x7   :  { %14 = vsyncpa [#allocation8 + $0x1], 0 }
   0x8   :  { %15 = vsyncpa [#allocation4], 0 }
   0x9   :  { %17 = vsyncpa [#allocation4 + $0x1], 0  ;;  %s909_s12 = smov 0   ;;  %s911_s13 = smov 0  }
   0xa   :  { %s913_s14 = smov 0   ;;  %s915_s15 = smov 0  }
   0xb   :  { %s917_s16 = smov 0   ;;  %s919_s17 = smov 0  }
   0xc LB: > { %s578_s18 = sadd.s32 4294967295, %s879_s17   ;;  %s579_s19 = sadd.s32 4294967294, %s879_s17   ;;  %s879_s17 = sphi %s919_s17, %s23_s17   ;;  %s875_s16 = sphi %s917_s16, %s1195_s16   ;;  %s871_s15 = sphi %s915_s15, %s1194_s15   ;;  %s867_s14 = sphi %s913_s14, %s1193_s14   ;;  %s863_s13 = sphi %s911_s13, %s1192_s13   ;;  %s859_s12 = sphi %s909_s12, %s1191_s12  }
   0xd   : > { %s65_s20 = sadd.s32 1, %s867_s14  ;;  %p72_p0 = scmp.ne.s32.totalorder %s867_s14, %s863_s13 }
   0xe   : > { %p73_p1 = scmp.eq.s32.totalorder %s879_s17, 0  ;;  %p78_p2 = scmp.ne.s32.totalorder %s863_s13, %s859_s12 }
   0xf   : > { %p947_p3 = scmp.eq.s32.totalorder %s578_s18, 0  ;;  %p130_p4 = scmp.eq.s32.totalorder %s578_s18, 1 }
  0x10   : > { %p74_p5 = por %p73_p1, %p72_p0  ;;  %p136_p6 = scmp.eq.s32.totalorder %s579_s19, 1 }
  0x11   : > { %s1175_s21 = scalar_select %p947_p3, 1, 0 }
  0x12   : > { %p953_p7 = por %p947_p3, %p78_p2  ;;  %p957_p8 = por %p130_p4, %p72_p0 }
  0x13   : > { %p961_p9 = por %p136_p6, %p78_p2  ;;  %p580_p10 = scmp.ge.s32.totalorder %s879_s17, 1 }
  0x14   : > { %s1176_s22 = scalar_select %p953_p7, 1, 0 }
  0x15   : > { %s1177_s23 = scalar_select %p957_p8, 1, 0 }
  0x16   : > { %s1178_s24 = scalar_select %p961_p9, 1, 0 }
  0x17   : > { %p143_p11 = scmp.lt.s32.totalorder %s879_s17, 3  ;;  %p648_p1 = scmp.lt.s32.totalorder %s879_s17, 2 }
  0x18   : > { %s974_s26 = sand.u32 1, %s867_s14   ;;  %s35_s28 = sadd.s32 1, %s875_s16 }
  0x19   : > { %p968_p13 = pnand %p580_p10, %p143_p11  ;;  %p978_p4 = pnand %p648_p1, %p74_p5 }
  0x1a   : > { %s583_s29 = sshll.u32 %s974_s26, 4  ;;  %p37_p6 = scmp.ge.s32.totalorder %s35_s28, 2 }
  0x1b   : > { %s1179_s25 = scalar_select %p968_p13, 1, 0 }
  0x1c   : > { %p632_p0 = pneg %p968_p13  ;;  %s1181_s0 = sld [smem:[#allocation15_spill]] }
  0x1e   : > { %p633_p2 = pnand %p632_p0, %p947_p3 }
  0x20   : > { %p718_p11 = pneg %p633_p2 }
  0x22   : > { %s716_s5 = scalar_lea.hbm %s1181_s0, 16 }
  0x23   : > { %p717_p10 = scmp.ne.s32.totalorder %s1181_s0, %s716_s5  ;;  %p723_p5 = scmp.lt.u32.totalorder %s716_s5, %s1181_s0 }
  0x25   : > { %p719_p12 = pnand %p718_p11, %p717_p10 }
  0x27   : > { %p720_p9 = pneg %p719_p12 }
  0x29   : > { %p725_p1 = pnand %p723_p5, %p720_p9 }
  0x2b   : > { %728 = shalt.err (!%p725_p1)
}
  0x2c   : > { %s881_s10 = smov [#allocation2]   ;;  %s1197_s28 = smov (%p37_p6, %s35_s28), 0 }
  0x2d   : > { %635 = dma.hbm_to_smem (!%p633_p2), %s1181_s0, 16, %s881_s10, [#allocation5]  }
  0x2e   : > { %1182 = sst [smem:[#allocation14_spill]] %s1197_s28  ;;  %s584_s19 = sshll.u32 %s875_s16, 7 }
  0x2f   : > { %s62_s30 = ssub.s32 %s875_s16, %s1197_s28  ;;  %s1183_s1 = sld [smem:[#allocation16_spill]] }
  0x30   : > { %p63_p9 = scmp.eq.s32.totalorder %s62_s30, 0  ;;  %s169_s7 = scalar_lea.vmem [#allocation6], %s583_s29 }
  0x31   : > { %s176_s8 = sshll.u32 %s169_s7, 4  ;;  %s166_s10 = scalar_lea.sflag [#allocation3], %s974_s26  ;;  %s1008_s8 = int_to_ptr.vmem [resolvable:$true] %s176_s8 }
  0x32   : > { %s1013_s9 = scalar_select %p63_p9, %s867_s14, %s65_s20  }
  0x33   : > { %p731_p0 = pneg %p978_p4 }
  0x35   : > { %s1006_s6 = scalar_lea.hbm %s1183_s1, %s584_s19  ;;  %s734_s30 = scalar_lea.hbm %s1183_s1, 512 }
  0x36   : > { %s729_s11 = scalar_lea.hbm %s1006_s6, 256  ;;  %p735_p10 = scmp.lt.u32.totalorder %s1006_s6, %s1183_s1 }
  0x37   : > { %p730_p12 = scmp.ne.s32.totalorder %s1006_s6, %s729_s11  ;;  %p736_p11 = scmp.lt.u32.totalorder %s734_s30, %s729_s11 }
  0x38   : > { %p738_p1 = scmp.lt.u32.totalorder %s729_s11, %s1006_s6 }
  0x39   : > { %p732_p2 = pnand %p731_p0, %p730_p12  ;;  %p737_p5 = por %p736_p11, %p735_p10 }
  0x3b   : > { %p733_p6 = pneg %p732_p2  ;;  %p739_p9 = por %p738_p1, %p737_p5 }
  0x3d   : > { %p740_p8 = pnand %p739_p9, %p733_p6 }
  0x3f   : > { %743 = shalt.err (!%p740_p8)
}
  0x40   : > { %s744_s20 = scalar_lea.vmem %s1008_s8, 256  ;;  %s882_s5 = smov [#allocation6]  }
  0x41   : > { %p745_p12 = scmp.ne.s32.totalorder %s1008_s8, %s744_s20  ;;  %s749_s7 = sshll.u32 %s882_s5, 4  ;;  %s750_s7 = int_to_ptr.vmem [resolvable:$false] %s749_s7 }
  0x42   : > { %s751_s18 = scalar_lea.vmem %s750_s7, 512  ;;  %p752_p3 = scmp.lt.s32.totalorder %s1008_s8, %s750_s7 }
  0x43   : > { %p747_p2 = pnand %p745_p12, %p731_p0  ;;  %p753_p10 = scmp.lt.s32.totalorder %s751_s18, %s744_s20 }
  0x45   : > { %p748_p7 = pneg %p747_p2  ;;  %p754_p11 = por %p753_p10, %p752_p3 }
  0x47   : > { %p755_p5 = pnand %p754_p11, %p748_p7 }
  0x49   : > { %758 = shalt.err (!%p755_p5)
}
  0x4a   : > { %s883_s11 = smov 256   ;;  %s884_s19 = smov 128  }
  0x4b   : > { %s885_s30 = smov 8   ;;  %s585_s29 = sshll.u32 %s974_s26, 2 }
  0x4c   : > { %639 = dma.hbm_to_vmem [thread:$0]  (!%p978_p4), %s1006_s6, 256, %s1008_s8, %s166_s10, %s883_s11, %s884_s19, %s885_s30  }
  0x4d   : > { %s586_s4 = sshll.u32 %s875_s16, 6  ;;  %s190_s18 = scalar_lea.vmem [#allocation7], %s585_s29 }
  0x4e   : > { %s1048_s7 = scalar_lea.hbm %s1165_s2, %s586_s4  ;;  %s198_s0 = sshll.u32 %s190_s18, 4  ;;  %s199_s0 = int_to_ptr.vmem [resolvable:$true] %s198_s0 }
  0x4f   : > { %s187_s1 = scalar_lea.sflag [#allocation8], %s974_s26  ;;  %s759_s28 = scalar_lea.hbm %s1048_s7, 64 }
  0x50   : > { %p760_p3 = scmp.ne.s32.totalorder %s1048_s7, %s759_s28  ;;  %s764_s10 = scalar_lea.hbm %s1165_s2, 128 }
  0x51   : > { %p765_p6 = scmp.lt.u32.totalorder %s1048_s7, %s1165_s2  ;;  %p766_p1 = scmp.lt.u32.totalorder %s764_s10, %s759_s28 }
  0x52   : > { %p762_p7 = pnand %p760_p3, %p731_p0  ;;  %p768_p12 = scmp.lt.u32.totalorder %s759_s28, %s1048_s7 }
  0x53   : > { %p767_p9 = por %p766_p1, %p765_p6 }
  0x54   : > { %p763_p8 = pneg %p762_p7 }
  0x55   : > { %p769_p2 = por %p768_p12, %p767_p9 }
  0x57   : > { %p770_p10 = pnand %p769_p2, %p763_p8 }
  0x59   : > { %773 = shalt.err (!%p770_p10)
}
  0x5a   : > { %s774_s26 = scalar_lea.vmem %s199_s0, 64  ;;  %s886_s30 = smov [#allocation7]  }
  0x5b   : > { %p775_p11 = scmp.ne.s32.totalorder %s199_s0, %s774_s26  ;;  %s779_s29 = sshll.u32 %s886_s30, 4  ;;  %s780_s29 = int_to_ptr.vmem [resolvable:$false] %s779_s29 }
  0x5c   : > { %s781_s4 = scalar_lea.vmem %s780_s29, 128  ;;  %p782_p7 = scmp.lt.s32.totalorder %s199_s0, %s780_s29 }
  0x5d   : > { %p777_p5 = pnand %p775_p11, %p731_p0  ;;  %p783_p13 = scmp.lt.s32.totalorder %s781_s4, %s774_s26 }
  0x5f   : > { %p778_p3 = pneg %p777_p5  ;;  %p784_p1 = por %p783_p13, %p782_p7 }
  0x61   : > { %p785_p6 = pnand %p784_p1, %p778_p3 }
  0x63   : > { %788 = shalt.err (!%p785_p6)
}
  0x64   : > { %642 = dma.hbm_to_vmem [thread:$0]  (!%p978_p4), %s1048_s7, 64, %s199_s0, %s187_s1  }
  0x65   : > { %p1184_p8 = scmp.ne.s32.totalorder %s1179_s25, 0 }
  0x66   : > { %p1185_p9 = scmp.ne.s32.totalorder (!%p1184_p8), %s1175_s21, 0 }
  0x67   : > { %207 = sbr.rel (%p1184_p8) target bundleno = 628 (0x274), region = 32 }
  0x6e   : > { %842 = dma.done.wait (%p1185_p9), [#allocation5], 16  }
  0x6f   : > { %844 = vsyncadd (%p1185_p9), [#allocation5], 4294967280  ;;  %s1077_s28 = sand.u32 1, %s863_s13   ;;  %p1186_p13 = scmp.ne.s32.totalorder %s1176_s22, 0 }
  0x70   : > { %s589_s20 = sshll.u32 %s1077_s28, 4  ;;  %s214_s5 = scalar_lea.sflag [#allocation3], %s1077_s28 }
  0x71   : > { %s217_s27 = scalar_lea.vmem [#allocation6], %s589_s20 }
  0x72   : > { %846 = dma.done.wait (%p1186_p13), %s214_s5, 256  }
  0x73   : > { %848 = vsyncadd (%p1186_p13), %s214_s5, 4294967040  ;;  %s590_s0 = sshll.u32 %s1077_s28, 2  ;;  %s223_s1 = scalar_lea.sflag [#allocation8], %s1077_s28 }
  0x74   : > { %s1087_s21 = scalar_lea.vmem [#allocation7], %s590_s0 }
  0x75   : > { %850 = dma.done.wait (%p1186_p13), %s223_s1, 64  }
  0x76   : > { %852 = vsyncadd (%p1186_p13), %s223_s1, 4294967232 }
  0x77   : > { %231 = sfence }
  0x78   : > { %v1093_v0 = vld [vmem:[%s217_s27] sm:$0xff]  ;;  %v1095_v1 = vld [vmem:[%s217_s27 + $0x8] sm:$0xff]  ;;  %v294_v2 = vlaneseq  ;;  %vm305_vm0 = vcmask 130048   ;;  %v887_v11 = vmov 0.0   ;;  %s437_s22 = sld [smem:[#allocation2]]  ;;  %s598_s25 = sld [smem:[#allocation2 + $0x1]] }
  0x79   : > { %v266_v3 = vand.u32 2147483647, %v1093_v0  ;;  %v267_v4 = vand.u32 2147483647, %v1095_v1  ;;  %v264_v25 = vmax.f32 %v1093_v0, 0.0  ;;  %v265_v28 = vmax.f32 %v1095_v1, 0.0 }
  0x7a   : > { %v295_v5 = vshrl.u32 %v294_v2, 7  ;;  %v298_v6 = vand.u32 127, %v294_v2  ;;  %v596_v44 = vld [vmem:[%s1087_s21 + $0x2] ss:$0 sm:$0xff]  ;;  %v597_v47 = vld [vmem:[%s1087_s21 + $0x1] ss:$0 sm:$0xff]  ;;  %v424_v55 = vmul.f32 %v1093_v0, %v1093_v0  ;;  %v425_v56 = vmul.f32 %v1095_v1, %v1095_v1 }
  0x7b   : > { %v268_v7 = vsub.f32 0.0, %v266_v3  ;;  %v269_v8 = vsub.f32 0.0, %v267_v4  ;;  %s591_s18 = sshll.u32 %s1077_s28, 3  ;;  %s600_s8 = sshll.u32 %s871_s15, 7 }
  0x7c   : > { %vm299_vm1 = vcmp.le.s32.totalorder %v298_v6, %v295_v5  ;;  %v296_v32 = vadd.s32 8, %v295_v5  ;;  %v426_v58 = vadd.f32 %v425_v56, %v424_v55  ;;  %s254_s10 = scalar_lea.vmem [#allocation9], %s591_s18  ;;  %s1114_s30 = scalar_lea.hbm %s1166_s3, %s600_s8 }
  0x7d   : > { %v270_v9 = vmul.f32 1.442695, %v268_v7  ;;  %v272_v10 = vmul.f32 1.442695, %v269_v8  ;;  %v592_v12 = vsel %vm299_vm1, 1.0, %v887_v11  ;;  %s463_s11 = sshll.u32 %s254_s10, 4  ;;  %s1116_s11 = int_to_ptr.vmem [resolvable:$true] %s463_s11 }
  0x7e   : > { %611 = vmatprep.mubr.msk.f32.mxu0 %vm305_vm0, %v592_v12  ;;  %vm300_vm4 = vcmp.le.s32.totalorder %v298_v6, %v296_v32  ;;  %vm396_vm5 = vcmp.lt.s32.totalorder %v296_v32, 15  ;;  %s450_s29 = scalar_lea.sflag [#allocation4], %s1077_s28  ;;  %s789_s4 = scalar_lea.vmem %s1116_s11, 128 }
  0x7f   : > { %704 = vpow2.f32 %v270_v9  ;;  %v593_v37 = vsel %vm300_vm4, 1.0, %v887_v11  ;;  %v439_v11 = vstv %s437_s22  ;;  %p790_p4 = scmp.ne.s32.totalorder %s1116_s11, %s789_s4  ;;  %p1187_p0 = scmp.ne.s32.totalorder %s1177_s23, 0 }
  0x80   : > { %706 = vpow2.f32 %v272_v10  ;;  %s888_s15 = smov [#allocation9]  }
  0x81   : > { %p791_p12 = pnand %p790_p4, %p1187_p0  ;;  %s793_s20 = sshll.u32 %s888_s15, 4  ;;  %s794_s20 = int_to_ptr.vmem [resolvable:$false] %s793_s20 }
  0x82   : > { %s795_s5 = scalar_lea.vmem %s794_s20, 256  ;;  %p796_p10 = scmp.lt.s32.totalorder %s1116_s11, %s794_s20 }
  0x83   : > { %p792_p2 = pneg %p791_p12  ;;  %p797_p11 = scmp.lt.s32.totalorder %s795_s5, %s789_s4 }
  0x85   : > { %p798_p5 = por %p797_p11, %p796_p10 }
  0x87   : > { %p799_p3 = pnand %p798_p5, %p792_p2 }
  0x89   : > { %v705_v13 = vpop.eup %704 }
  0x8a   : > { %v707_v14 = vpop.eup %706  ;;  %v274_v15 = vadd.f32 1.0, %v705_v13  ;;  %v277_v17 = vmul.f32 -0.5, %v705_v13  ;;  %v280_v20 = vand.u32 2147483647, %v705_v13 }
  0x8b   : > { %v283_v16 = vadd.f32 1.0, %v707_v14  ;;  %v286_v18 = vmul.f32 -0.5, %v707_v14  ;;  %v289_v22 = vand.u32 2147483647, %v707_v14 }
  0x8c   : > { %708 = vlog2.f32 %v274_v15  ;;  %v278_v19 = vadd.f32 1.0, %v277_v17  ;;  %vm281_vm2 = vcmp.lt.f32.partialorder %v280_v20, 0.0004427343 }
  0x8d   : > { %710 = vlog2.f32 %v283_v16  ;;  %v287_v21 = vadd.f32 1.0, %v286_v18  ;;  %vm290_vm3 = vcmp.lt.f32.partialorder %v289_v22, 0.0004427343 }
  0x8e   : > { %v279_v23 = vmul.f32 %v705_v13, %v278_v19  ;;  %v443_v13 = vstv %s598_s25 }
  0x8f   : > { %v288_v26 = vmul.f32 %v707_v14, %v287_v21 }
  0x96   : > { %v709_v24 = vpop.eup %708 }
  0x97   : > { %v711_v27 = vpop.eup %710  ;;  %v276_v29 = vmul.f32 0.6931472, %v709_v24 }
  0x98   : > { %v285_v30 = vmul.f32 0.6931472, %v711_v27 }
  0x99   : > { %v282_v31 = vsel %vm281_vm2, %v279_v23, %v276_v29 }
  0x9a   : > { %v291_v33 = vsel %vm290_vm3, %v288_v26, %v285_v30  ;;  %v292_v34 = vadd.f32 %v282_v31, %v264_v25 }
  0x9b   : > { %v293_v35 = vadd.f32 %v291_v33, %v265_v28 }
  0x9d   : > { %v614_v36 = vpack.c.bf16 %v293_v35, %v292_v34 }
  0x9f   : > { %615 = vmatprep.subr.bf16.mxu0 %v614_v36 }
  0xa0   : > { %617 = vmatpush3.bf16.msra.mxu0 %v614_v36 }
  0xa3   : > { %612 = vmatmul.mubr.msk.f32.vlgmr.msra.gmra.mrb[0].mxu0 %vm305_vm0, %v593_v37 }
 0x176   : > { %v613_v38 = vpop.f32.mrb[0].mxu0 }
 0x177   : > { %v388_v39 = vsub.f32 0.0, %v613_v38  ;;  %v378_v40 = vpop.f32.mrb[1].mxu0 }
 0x178   : > { %v387_v41 = vsub.f32 0.0, %v378_v40 }
 0x179   : > { %v391_v42 = vmul.f32 1.442695, %v388_v39 }
 0x17a   : > { %v389_v43 = vmul.f32 1.442695, %v387_v41 }
 0x17b   : > { %712 = vpow2.f32 %v391_v42 }
 0x17c   : > { %714 = vpow2.f32 %v389_v43 }
 0x185   : > { %v713_v45 = vpop.eup %712 }
 0x186   : > { %v715_v46 = vpop.eup %714  ;;  %v402_v48 = vsub.f32 %v713_v45, %v596_v44 }
 0x187   : > { %v401_v49 = vsub.f32 %v715_v46, %v596_v44 }
 0x188   : > { %v404_v50 = vsel %vm396_vm5, %v402_v48, 0.0 }
 0x189   : > { %v409_v51 = vmul.f32 %v597_v47, %v401_v49  ;;  %v410_v52 = vmul.f32 %v597_v47, %v404_v50 }
 0x18b   : > { %v411_v53 = vmul.f32 %v409_v51, %v401_v49  ;;  %v412_v54 = vmul.f32 %v410_v52, %v404_v50 }
 0x18d   : > { %v413_v57 = vadd.f32 %v412_v54, %v411_v53 }
 0x18f   : > { %414 = vadd.xlane.f32.xlu0 %v413_v57 }
 0x193   : > { %427 = vadd.xlane.f32.xlu0 %v426_v58 }
 0x21c   : > { %v415_v59 = vpop.xlane.xlu0 %414 }
 0x21d   : > { %v416_v60 = vrot.slane %v415_v59, 4 }
 0x21f   : > { %v417_v61 = vadd.f32 %v416_v60, %v415_v59 }
 0x220   : > { %v428_v62 = vpop.xlane.xlu0 %427 }
 0x221   : > { %v418_v63 = vrot.slane %v417_v61, 2  ;;  %v429_v2 = vrot.slane %v428_v62, 4 }
 0x223   : > { %v430_v3 = vadd.f32 %v429_v2, %v428_v62  ;;  %v419_v4 = vadd.f32 %v418_v63, %v417_v61 }
 0x225   : > { %v431_v5 = vrot.slane %v430_v3, 2  ;;  %v420_v6 = vrot.slane %v419_v4, 1 }
 0x227   : > { %v432_v7 = vadd.f32 %v431_v5, %v430_v3  ;;  %v421_v0 = vadd.f32 %v420_v6, %v419_v4 }
 0x229   : > { %618 = vpush %v421_v0  ;;  %v433_v8 = vrot.slane %v432_v7, 1 }
 0x22b   : > { %v434_v1 = vadd.f32 %v433_v8, %v432_v7 }
 0x22d   : > { %620 = vpush %v434_v1 }
 0x25a   : > { %s619_s7 = spop %618 }
 0x25b   : > { %v423_v9 = vstv %s619_s7 }
 0x25c   : > { %v438_v10 = vmul.f32 0.00033333333, %v423_v9 }
 0x25e   : > { %s621_s6 = spop %620  ;;  %v440_v15 = vmul.f32 %v439_v11, %v438_v10 }
 0x25f   : > { %v436_v12 = vstv %s621_s6 }
 0x260   : > { %v442_v14 = vmul.f32 0.0003125, %v436_v12 }
 0x262   : > { %v444_v16 = vmul.f32 %v443_v13, %v442_v14 }
 0x264   : > { %v445_v17 = vadd.f32 %v444_v16, %v440_v15 }
 0x266   : > { %448 = vst [vmem:[%s254_s10] sm:$0xff] %v445_v17 }
 0x267   : > { %802 = shalt.err (!%p799_p3)
}
 0x268   : > { %s803_s28 = scalar_lea.hbm %s1114_s30, 128  ;;  %s807_s1 = scalar_lea.hbm %s1166_s3, 256 }
 0x269   : > { %p804_p7 = scmp.ne.s32.totalorder %s1114_s30, %s803_s28  ;;  %p808_p8 = scmp.lt.u32.totalorder %s1114_s30, %s1166_s3 }
 0x26a   : > { %p809_p9 = scmp.lt.u32.totalorder %s807_s1, %s803_s28  ;;  %p811_p4 = scmp.lt.u32.totalorder %s803_s28, %s1114_s30 }
 0x26b   : > { %p805_p1 = pnand %p804_p7, %p1187_p0 }
 0x26c   : > { %p810_p13 = por %p809_p9, %p808_p8 }
 0x26d   : > { %p806_p6 = pneg %p805_p1 }
 0x26e   : > { %p812_p12 = por %p811_p4, %p810_p13 }
 0x270   : > { %p813_p2 = pnand %p812_p12, %p806_p6 }
 0x272   : > { %816 = shalt.err (!%p813_p2)
}
 0x273   : > { %630 = dma.vmem_to_hbm [thread:$0]  (%p1187_p0), %s1116_s11, 128, %s1114_s30, %s450_s29  }
 0x274 PF: > { %s475_s25 = sand.u32 1, %s859_s12   ;;  %p1188_p10 = scmp.ne.s32.totalorder %s1178_s24, 0 }
 0x275   : > { %p1189_p11 = scmp.ge.s32.totalorder %s879_s17, 2  ;;  %s476_s7 = scalar_lea.sflag [#allocation4], %s475_s25 }
 0x277   : > { %p644_p5 = pnand %p1189_p11, %p1188_p10 }
 0x279   : > { %854 = dma.done.wait (!%p644_p5), %s476_s7, 128  }
 0x27a   : > { %856 = vsyncadd (!%p644_p5), %s476_s7, 4294967168  ;;  %s23_s17 = sadd.s32 1, %s879_s17   ;;  %s1190_s23 = sld [smem:[#allocation14_spill]] }
 0x27b   : > { %p20_p3 = scmp.ge.s32.totalorder %s23_s17, 4   ;;  %s1191_s12 = smov %s863_s13 }
 0x27c   : > { %s1192_s13 = smov %s867_s14  ;;  %s1193_s14 = smov %s1013_s9 }
 0x27d   : > { %s1194_s15 = smov %s875_s16  ;;  %22 = sbr.rel (!%p20_p3) target bundleno = 12 (0xc), region = 99 }
 0x280   : > { %s1195_s16 = smov %s1190_s23 }
 0x284   :  { %481 = vsyncpa [#allocation3], 1 }
 0x285   :  { %483 = vsyncpa [#allocation3 + $0x1], 1 }
 0x286   :  { %484 = vsyncpa [#allocation8], 1 }
 0x287   :  { %486 = vsyncpa [#allocation8 + $0x1], 1 }
 0x288   :  { %487 = vsyncpa [#allocation4], 1 }
 0x289   :  { %489 = vsyncpa [#allocation4 + $0x1], 1 }
 0x28a   :  { %490 = vsyncpa [#allocation5], 1 }
 0x28b   :  { %492 = vsyncpa [#allocation5 + $0x1], 1 }

</bundles_post_ra>
